<compile_context>
chip_gen: v5e
topology: v5e:2x2
jax: 0.10.0
libtpu: 0.0.40
codegen_flags: <defaults>
</compile_context>

<pallas_src>
import jax
import jax.numpy as jnp
from jax import lax
from jax.experimental import pallas as pl
from jax.experimental.pallas import tpu as pltpu

EPS = 1e-12          # torch.nn.functional.normalize default eps
LANE = 128           # vreg lane width
SUB = 8              # vreg sublane width
_VMEM_BUDGET = 40 << 20   # planning budget for tile sizing (conservative across v5e/v6e/v7x)
_VMEM_LIMIT = 48 << 20    # scoped-VMEM limit handed to Mosaic (>16MiB v5e default, <64MiB v7x)


# ---------------------------------------------------------------------------
# Small helpers
# ---------------------------------------------------------------------------
def _rup(x, m):
    return ((x + m - 1) // m) * m


def _pad2(a, rows, cols):
    r, c = a.shape
    if r == rows and c == cols:
        return a
    return jnp.pad(a, ((0, rows - r), (0, cols - c)))


def _choose_tile_m(n, bytes_per_row, resident_bytes, tile_m_cap=512, budget=_VMEM_BUDGET):
    """Largest sublane-aligned batch tile that fits the VMEM budget, with padding waste
    bounded to < SUB rows per tile (review items 4/5/9)."""
    tm_cap = max(SUB, _rup(min(tile_m_cap, n), SUB))
    # double-buffered activation tiles + (assume double-buffered) resident weights
    while tm_cap > SUB and 2 * tm_cap * bytes_per_row + 2 * resident_bytes > budget:
        tm_cap = max(SUB, (tm_cap // 2) // SUB * SUB)
    num_tiles = -(-n // tm_cap)
    return _rup(-(-n // num_tiles), SUB)


# ---------------------------------------------------------------------------
# In-kernel math
# ---------------------------------------------------------------------------
def _mlp_l2norm(x, w1, b1, w2, b2):
    """l2_normalize( relu(x @ W1 + b1) @ W2 + b2 , axis=1 ) -- f32, MXU dots, EUP rsqrt."""
    h = jnp.dot(x, w1, preferred_element_type=jnp.float32) + b1
    h = jnp.maximum(h, 0.0)
    e = jnp.dot(h, w2, preferred_element_type=jnp.float32) + b2
    ss = jnp.sum(e * e, axis=1, keepdims=True)
    # x * rsqrt(max(ss, eps^2)) == x / max(||x||, eps)  (torch F.normalize semantics)
    return e * lax.rsqrt(jnp.maximum(ss, EPS * EPS))


# ---------------------------------------------------------------------------
# Kernels
# ---------------------------------------------------------------------------
def _word_table_kernel(glove_ref, w1_ref, b1_ref, w2_ref, b2_ref, out_t_ref):
    """Once per forward: normalize(word_mlp(all categories)), stored transposed (e_p, c_p)
    so downstream similarity matmuls see a contraction-major (K, N) RHS."""
    we = _mlp_l2norm(glove_ref[...], w1_ref[...], b1_ref[...], w2_ref[...], b2_ref[...])
    out_t_ref[...] = we.T   # (c_p, e_p) -> (e_p, c_p); both 128-multiples, one cheap XLU pass


def _infer_kernel(x_ref, iw1_ref, ib1_ref, iw2_ref, ib2_ref, wet_ref, sims_ref):
    """One batch tile: sims = normalize(img_mlp(x)) @ word_emb_table^T (precomputed)."""
    img_e = _mlp_l2norm(x_ref[...], iw1_ref[...], ib1_ref[...], iw2_ref[...], ib2_ref[...])
    sims_ref[...] = jnp.dot(img_e, wet_ref[...],
                            preferred_element_type=jnp.float32).astype(sims_ref.dtype)


def _train_kernel(x_ref, bg_ref,
                  iw1_ref, ib1_ref, iw2_ref, ib2_ref,
                  ww1_ref, wb1_ref, ww2_ref, wb2_ref,
                  img_ref, word_ref):
    """One batch tile: normalized image embeddings + normalized word embeddings
    (batch_glove already gathered in the wrapper)."""
    img_ref[...] = _mlp_l2norm(x_ref[...], iw1_ref[...], ib1_ref[...],
                               iw2_ref[...], ib2_ref[...]).astype(img_ref.dtype)
    word_ref[...] = _mlp_l2norm(bg_ref[...], ww1_ref[...], wb1_ref[...],
                                ww2_ref[...], wb2_ref[...]).astype(word_ref.dtype)


# ---------------------------------------------------------------------------
# Param preparation (pad + cast ONCE)
# ---------------------------------------------------------------------------
def prepare_params(params):
    """Pads the lane dims of weights/biases and the category rows of the glove table to 128
    and casts everything to f32.  Call once; reuse the result for every forward."""
    f32 = jnp.float32
    img_feat, hidden = params["img_w1"].shape
    embed = params["img_w2"].shape[1]
    ncat, glove_dim = params["category_glove"].shape
    h_p = _rup(hidden, LANE)
    e_p = _rup(embed, LANE)
    c_p = _rup(ncat, LANE)
    prepped = {
        "img_w1": _pad2(params["img_w1"].astype(f32), img_feat, h_p),
        "img_b1": _pad2(params["img_b1"].astype(f32).reshape(1, -1), 1, h_p),
        "img_w2": _pad2(params["img_w2"].astype(f32), h_p, e_p),
        "img_b2": _pad2(params["img_b2"].astype(f32).reshape(1, -1), 1, e_p),
        "word_w1": _pad2(params["word_w1"].astype(f32), glove_dim, h_p),
        "word_b1": _pad2(params["word_b1"].astype(f32).reshape(1, -1), 1, h_p),
        "word_w2": _pad2(params["word_w2"].astype(f32), h_p, e_p),
        "word_b2": _pad2(params["word_b2"].astype(f32).reshape(1, -1), 1, e_p),
        "category_glove": _pad2(params["category_glove"].astype(f32), c_p, glove_dim),
    }
    meta = {"img_feat": img_feat, "hidden": hidden, "embed": embed, "ncat": ncat,
            "glove_dim": glove_dim, "h_p": h_p, "e_p": e_p, "c_p": c_p}
    return prepped, meta


# ---------------------------------------------------------------------------
# Forward wrapper (mirrors JointModel.forward)
# ---------------------------------------------------------------------------
def joint_model_forward(prepped, meta, images, labels=None, tile_m=512):
    f32 = jnp.float32
    n = images.shape[0]
    img_feat, glove_dim = meta["img_feat"], meta["glove_dim"]
    h_p, e_p, c_p = meta["h_p"], meta["e_p"], meta["c_p"]
    embed, ncat = meta["embed"], meta["ncat"]

    x = images.astype(f32)

    def row_spec(shape):            # tiled over batch rows
        return pl.BlockSpec(shape, lambda i: (i, 0))

    def res_spec(shape):            # block index never changes -> stays resident in VMEM
        return pl.BlockSpec(shape, lambda i: (0, 0))

    img_w_args = (prepped["img_w1"], prepped["img_b1"], prepped["img_w2"], prepped["img_b2"])
    word_w_args = (prepped["word_w1"], prepped["word_b1"], prepped["word_w2"], prepped["word_b2"])
    img_w_specs = [res_spec((img_feat, h_p)), res_spec((1, h_p)),
                   res_spec((h_p, e_p)), res_spec((1, e_p))]
    img_w_bytes = sum(int(a.size) * 4 for a in img_w_args)
    word_w_bytes = sum(int(a.size) * 4 for a in word_w_args)

    cparams = pltpu.CompilerParams(dimension_semantics=("parallel",),
                                   vmem_limit_bytes=_VMEM_LIMIT)

    if labels is None:
        # 1) Precompute normalized word embeddings for all categories (once per forward),
        #    stored transposed so the similarity matmul needs no per-tile relayout.
        word_et = pl.pallas_call(
            _word_table_kernel,
            out_shape=jax.ShapeDtypeStruct((e_p, c_p), f32),
        )(prepped["category_glove"], *word_w_args)

        resident_bytes = img_w_bytes + e_p * c_p * 4
        tm = _choose_tile_m(n, 4 * (img_feat + c_p), resident_bytes, tile_m)
        n_p = _rup(n, tm)
        x_in = x if n_p == n else jnp.pad(x, ((0, n_p - n), (0, 0)))

        # 2) Batch-tiled: image MLP + normalize + one (tm,e_p)x(e_p,c_p) matmul.
        sims = pl.pallas_call(
            _infer_kernel,
            out_shape=jax.ShapeDtypeStruct((n_p, c_p), f32),
            grid=(n_p // tm,),
            in_specs=[row_spec((tm, img_feat))] + img_w_specs + [res_spec((e_p, c_p))],
            out_specs=row_spec((tm, c_p)),
            compiler_params=cparams,
        )(x_in, *img_w_args, word_et)
        return sims[:n, :ncat]
    else:
        # Cheap XLA gather (O(n * glove_dim)); replaces the in-kernel one-hot matmul.
        bg = prepped["category_glove"][labels.astype(jnp.int32)]          # (n, glove_dim)

        resident_bytes = img_w_bytes + word_w_bytes
        tm = _choose_tile_m(n, 4 * (img_feat + glove_dim + 2 * e_p), resident_bytes, tile_m)
        n_p = _rup(n, tm)
        if n_p != n:
            x_in = jnp.pad(x, ((0, n_p - n), (0, 0)))
            bg = jnp.pad(bg, ((0, n_p - n), (0, 0)))
        else:
            x_in = x

        word_w_specs = [res_spec((glove_dim, h_p)), res_spec((1, h_p)),
                        res_spec((h_p, e_p)), res_spec((1, e_p))]
        img_e, word_e = pl.pallas_call(
            _train_kernel,
            out_shape=(jax.ShapeDtypeStruct((n_p, e_p), f32),
                       jax.ShapeDtypeStruct((n_p, e_p), f32)),
            grid=(n_p // tm,),
            in_specs=[row_spec((tm, img_feat)), row_spec((tm, glove_dim))]
                     + img_w_specs + word_w_specs,
            out_specs=(row_spec((tm, e_p)), row_spec((tm, e_p))),
            compiler_params=cparams,
        )(x_in, bg, *img_w_args, *word_w_args)
        return img_e[:n, :embed], word_e[:n, :embed]


# ---------------------------------------------------------------------------
# Pure-JAX reference (torch semantics)
# ---------------------------------------------------------------------------
def _ref_mlp_norm(x, w1, b1, w2, b2):
    h = jnp.maximum(x @ w1 + b1, 0.0)
    e = h @ w2 + b2
    nrm = jnp.sqrt(jnp.sum(e * e, axis=1, keepdims=True))
    return e / jnp.maximum(nrm, EPS)


def _ref_forward(params, images, labels=None):
    img = _ref_mlp_norm(images, params["img_w1"], params["img_b1"],
                        params["img_w2"], params["img_b2"])
    if labels is not None:
        g = params["category_glove"][labels]
        w = _ref_mlp_norm(g, params["word_w1"], params["word_b1"],
                          params["word_w2"], params["word_b2"])
        return img, w
    w = _ref_mlp_norm(params["category_glove"], params["word_w1"], params["word_b1"],
                      params["word_w2"], params["word_b2"])
    return img @ w.T


# ---------------------------------------------------------------------------
# Main
# ---------------------------------------------------------------------------
if __name__ == "__main__":
    BATCH = 8
    IMG_FEAT = 64       # image feature dim fed to image_mlp
    GLOVE_DIM = 32      # glove vector dim fed to word_mlp
    HIDDEN = 64         # MLP hidden width
    EMBED = 32          # joint embedding dim
    NUM_CATEGORIES = 16

    key = jax.random.PRNGKey(0)
    keys = jax.random.split(key, 12)

    def init(k, shape, scale=0.1):
        return (scale * jax.random.normal(k, shape)).astype(jnp.float32)

    params = {
        # image_mlp: Linear(IMG_FEAT, HIDDEN) -> ReLU -> Linear(HIDDEN, EMBED)
        "img_w1": init(keys[0], (IMG_FEAT, HIDDEN)),
        "img_b1": init(keys[1], (HIDDEN,)),
        "img_w2": init(keys[2], (HIDDEN, EMBED)),
        "img_b2": init(keys[3], (EMBED,)),
        # word_mlp: Linear(GLOVE_DIM, HIDDEN) -> ReLU -> Linear(HIDDEN, EMBED)
        "word_w1": init(keys[4], (GLOVE_DIM, HIDDEN)),
        "word_b1": init(keys[5], (HIDDEN,)),
        "word_w2": init(keys[6], (HIDDEN, EMBED)),
        "word_b2": init(keys[7], (EMBED,)),
        # category glove embedding table
        "category_glove": init(keys[8], (NUM_CATEGORIES, GLOVE_DIM), scale=1.0),
    }

    images = init(keys[9], (BATCH, IMG_FEAT), scale=1.0)
    labels = jax.random.randint(keys[10], (BATCH,), 0, NUM_CATEGORIES)

    # Pad + cast the parameters ONCE (review item: no per-call weight prep).
    prepped, meta = prepare_params(params)

    fwd_train = jax.jit(lambda p, x, l: joint_model_forward(p, meta, x, labels=l))
    fwd_infer = jax.jit(lambda p, x: joint_model_forward(p, meta, x, labels=None))

    # Training-mode path: (image_embs, word_embs)
    img_embs, word_embs = fwd_train(prepped, images, labels)
    img_embs = jax.block_until_ready(img_embs)
    word_embs = jax.block_until_ready(word_embs)

    # Inference-mode path: similarities (BATCH, NUM_CATEGORIES)
    sims = fwd_infer(prepped, images)
    sims = jax.block_until_ready(sims)

    # Sanity check against pure-JAX reference.
    ref_img, ref_word = _ref_forward(params, images, labels=labels)
    ref_sims = _ref_forward(params, images, labels=None)
    assert img_embs.shape == (BATCH, EMBED)
    assert word_embs.shape == (BATCH, EMBED)
    assert sims.shape == (BATCH, NUM_CATEGORIES)
    assert jnp.allclose(img_embs, ref_img, atol=1e-5)
    assert jnp.allclose(word_embs, ref_word, atol=1e-5)
    assert jnp.allclose(sims, ref_sims, atol=1e-5)

    print("KERNEL_OK")
</pallas_src>

<mosaic_0001>
module attributes {stable_mosaic.version = 11 : i64} {
  func.func @_train_kernel(%arg0: i32, %arg1: memref<8x64xf32, #tpu.memory_space<vmem>>, %arg2: memref<8x32xf32, #tpu.memory_space<vmem>>, %arg3: memref<64x128xf32, #tpu.memory_space<vmem>>, %arg4: memref<1x128xf32, #tpu.memory_space<vmem>>, %arg5: memref<128x128xf32, #tpu.memory_space<vmem>>, %arg6: memref<1x128xf32, #tpu.memory_space<vmem>>, %arg7: memref<32x128xf32, #tpu.memory_space<vmem>>, %arg8: memref<1x128xf32, #tpu.memory_space<vmem>>, %arg9: memref<128x128xf32, #tpu.memory_space<vmem>>, %arg10: memref<1x128xf32, #tpu.memory_space<vmem>>, %arg11: memref<8x128xf32, #tpu.memory_space<vmem>>, %arg12: memref<8x128xf32, #tpu.memory_space<vmem>>) attributes {dimension_semantics = [#tpu.dimension_semantics<parallel>], iteration_bounds = array<i64: 1>, scalar_prefetch = 0 : i64, scratch_operands = 0 : i64, tpu.core_type = #tpu.core_type<tc>, window_params = [{transform_indices = @transform_0, window_bounds = array<i64: 8, 64>}, {transform_indices = @transform_1, window_bounds = array<i64: 8, 32>}, {pipeline_mode = #tpu.pipeline_mode<synchronous>, transform_indices = @transform_2, window_bounds = array<i64: 64, 128>}, {pipeline_mode = #tpu.pipeline_mode<synchronous>, transform_indices = @transform_3, window_bounds = array<i64: 1, 128>}, {pipeline_mode = #tpu.pipeline_mode<synchronous>, transform_indices = @transform_4, window_bounds = array<i64: 128, 128>}, {pipeline_mode = #tpu.pipeline_mode<synchronous>, transform_indices = @transform_5, window_bounds = array<i64: 1, 128>}, {pipeline_mode = #tpu.pipeline_mode<synchronous>, transform_indices = @transform_6, window_bounds = array<i64: 32, 128>}, {pipeline_mode = #tpu.pipeline_mode<synchronous>, transform_indices = @transform_7, window_bounds = array<i64: 1, 128>}, {pipeline_mode = #tpu.pipeline_mode<synchronous>, transform_indices = @transform_8, window_bounds = array<i64: 128, 128>}, {pipeline_mode = #tpu.pipeline_mode<synchronous>, transform_indices = @transform_9, window_bounds = array<i64: 1, 128>}, {transform_indices = @transform_10, window_bounds = array<i64: 8, 128>}, {transform_indices = @transform_11, window_bounds = array<i64: 8, 128>}]} {
    %c0 = arith.constant 0 : index
    %c0_0 = arith.constant 0 : index
    %0 = vector.load %arg1[%c0, %c0_0] : memref<8x64xf32, #tpu.memory_space<vmem>>, vector<8x64xf32>
    %c0_1 = arith.constant 0 : index
    %c0_2 = arith.constant 0 : index
    %1 = vector.load %arg3[%c0_1, %c0_2] : memref<64x128xf32, #tpu.memory_space<vmem>>, vector<64x128xf32>
    %c0_3 = arith.constant 0 : index
    %c0_4 = arith.constant 0 : index
    %2 = vector.load %arg4[%c0_3, %c0_4] : memref<1x128xf32, #tpu.memory_space<vmem>>, vector<1x128xf32>
    %c0_5 = arith.constant 0 : index
    %c0_6 = arith.constant 0 : index
    %3 = vector.load %arg5[%c0_5, %c0_6] : memref<128x128xf32, #tpu.memory_space<vmem>>, vector<128x128xf32>
    %c0_7 = arith.constant 0 : index
    %c0_8 = arith.constant 0 : index
    %4 = vector.load %arg6[%c0_7, %c0_8] : memref<1x128xf32, #tpu.memory_space<vmem>>, vector<1x128xf32>
    %cst = arith.constant dense<0.000000e+00> : vector<8x128xf32>
    %5 = tpu.matmul %0, %1, %cst {dimension_numbers = #tpu.dot_dimension_numbers<[1], [0], [0], [1], [0, 0, 1, 1], [], []>} : vector<8x64xf32>, vector<64x128xf32>, vector<8x128xf32> -> vector<8x128xf32>
    %6 = vector.broadcast %2 : vector<1x128xf32> to vector<8x128xf32>
    %7 = arith.addf %5, %6 : vector<8x128xf32>
    %cst_9 = arith.constant 0.000000e+00 : f32
    %8 = vector.broadcast %cst_9 : f32 to vector<8x128xf32>
    %9 = arith.maximumf %7, %8 : vector<8x128xf32>
    %cst_10 = arith.constant dense<0.000000e+00> : vector<8x128xf32>
    %10 = tpu.matmul %9, %3, %cst_10 {dimension_numbers = #tpu.dot_dimension_numbers<[1], [0], [0], [1], [0, 0, 1, 1], [], []>} : vector<8x128xf32>, vector<128x128xf32>, vector<8x128xf32> -> vector<8x128xf32>
    %11 = vector.broadcast %4 : vector<1x128xf32> to vector<8x128xf32>
    %12 = arith.addf %10, %11 : vector<8x128xf32>
    %13 = arith.mulf %12, %12 : vector<8x128xf32>
    %cst_11 = arith.constant dense<0.000000e+00> : vector<8xf32>
    %14 = vector.multi_reduction <add>, %13, %cst_11 [1] : vector<8x128xf32> to vector<8xf32>
    %15 = vector.shape_cast %14 : vector<8xf32> to vector<8x1xf32>
    %cst_12 = arith.constant 1.000000e-24 : f32
    %16 = vector.broadcast %cst_12 : f32 to vector<8x1xf32>
    %17 = arith.maximumf %15, %16 : vector<8x1xf32>
    %18 = math.rsqrt %17 : vector<8x1xf32>
    %19 = vector.broadcast %18 : vector<8x1xf32> to vector<8x128xf32>
    %20 = arith.mulf %12, %19 : vector<8x128xf32>
    %c0_13 = arith.constant 0 : index
    %c0_14 = arith.constant 0 : index
    %21 = vector.load %arg11[%c0_13, %c0_14] : memref<8x128xf32, #tpu.memory_space<vmem>>, vector<8x128xf32>
    tpu.vector_store %arg11[%c0_13, %c0_14], %20 {strides = array<i32>} : memref<8x128xf32, #tpu.memory_space<vmem>>, vector<8x128xf32>,
    %c0_15 = arith.constant 0 : index
    %c0_16 = arith.constant 0 : index
    %22 = vector.load %arg2[%c0_15, %c0_16] : memref<8x32xf32, #tpu.memory_space<vmem>>, vector<8x32xf32>
    %c0_17 = arith.constant 0 : index
    %c0_18 = arith.constant 0 : index
    %23 = vector.load %arg7[%c0_17, %c0_18] : memref<32x128xf32, #tpu.memory_space<vmem>>, vector<32x128xf32>
    %c0_19 = arith.constant 0 : index
    %c0_20 = arith.constant 0 : index
    %24 = vector.load %arg8[%c0_19, %c0_20] : memref<1x128xf32, #tpu.memory_space<vmem>>, vector<1x128xf32>
    %c0_21 = arith.constant 0 : index
    %c0_22 = arith.constant 0 : index
    %25 = vector.load %arg9[%c0_21, %c0_22] : memref<128x128xf32, #tpu.memory_space<vmem>>, vector<128x128xf32>
    %c0_23 = arith.constant 0 : index
    %c0_24 = arith.constant 0 : index
    %26 = vector.load %arg10[%c0_23, %c0_24] : memref<1x128xf32, #tpu.memory_space<vmem>>, vector<1x128xf32>
    %cst_25 = arith.constant dense<0.000000e+00> : vector<8x128xf32>
    %27 = tpu.matmul %22, %23, %cst_25 {dimension_numbers = #tpu.dot_dimension_numbers<[1], [0], [0], [1], [0, 0, 1, 1], [], []>} : vector<8x32xf32>, vector<32x128xf32>, vector<8x128xf32> -> vector<8x128xf32>
    %28 = vector.broadcast %24 : vector<1x128xf32> to vector<8x128xf32>
    %29 = arith.addf %27, %28 : vector<8x128xf32>
    %cst_26 = arith.constant 0.000000e+00 : f32
    %30 = vector.broadcast %cst_26 : f32 to vector<8x128xf32>
    %31 = arith.maximumf %29, %30 : vector<8x128xf32>
    %cst_27 = arith.constant dense<0.000000e+00> : vector<8x128xf32>
    %32 = tpu.matmul %31, %25, %cst_27 {dimension_numbers = #tpu.dot_dimension_numbers<[1], [0], [0], [1], [0, 0, 1, 1], [], []>} : vector<8x128xf32>, vector<128x128xf32>, vector<8x128xf32> -> vector<8x128xf32>
    %33 = vector.broadcast %26 : vector<1x128xf32> to vector<8x128xf32>
    %34 = arith.addf %32, %33 : vector<8x128xf32>
    %35 = arith.mulf %34, %34 : vector<8x128xf32>
    %cst_28 = arith.constant dense<0.000000e+00> : vector<8xf32>
    %36 = vector.multi_reduction <add>, %35, %cst_28 [1] : vector<8x128xf32> to vector<8xf32>
    %37 = vector.shape_cast %36 : vector<8xf32> to vector<8x1xf32>
    %cst_29 = arith.constant 1.000000e-24 : f32
    %38 = vector.broadcast %cst_29 : f32 to vector<8x1xf32>
    %39 = arith.maximumf %37, %38 : vector<8x1xf32>
    %40 = math.rsqrt %39 : vector<8x1xf32>
    %41 = vector.broadcast %40 : vector<8x1xf32> to vector<8x128xf32>
    %42 = arith.mulf %34, %41 : vector<8x128xf32>
    %c0_30 = arith.constant 0 : index
    %c0_31 = arith.constant 0 : index
    %43 = vector.load %arg12[%c0_30, %c0_31] : memref<8x128xf32, #tpu.memory_space<vmem>>, vector<8x128xf32>
    tpu.vector_store %arg12[%c0_30, %c0_31], %42 {strides = array<i32>} : memref<8x128xf32, #tpu.memory_space<vmem>>, vector<8x128xf32>,
    return
  }
  func.func @transform_0(%arg0: i32) -> (i32, i32) {
    %c0_i32 = arith.constant 0 : i32
    %c0_i32_0 = arith.constant 0 : i32
    return %arg0, %c0_i32 : i32, i32
  }
  func.func @transform_1(%arg0: i32) -> (i32, i32) {
    %c0_i32 = arith.constant 0 : i32
    %c0_i32_0 = arith.constant 0 : i32
    return %arg0, %c0_i32 : i32, i32
  }
  func.func @transform_2(%arg0: i32) -> (i32, i32) {
    %c0_i32 = arith.constant 0 : i32
    %c0_i32_0 = arith.constant 0 : i32
    %c0_i32_1 = arith.constant 0 : i32
    return %c0_i32, %c0_i32_0 : i32, i32
  }
  func.func @transform_3(%arg0: i32) -> (i32, i32) {
    %c0_i32 = arith.constant 0 : i32
    %c0_i32_0 = arith.constant 0 : i32
    %c0_i32_1 = arith.constant 0 : i32
    return %c0_i32, %c0_i32_0 : i32, i32
  }
  func.func @transform_4(%arg0: i32) -> (i32, i32) {
    %c0_i32 = arith.constant 0 : i32
    %c0_i32_0 = arith.constant 0 : i32
    %c0_i32_1 = arith.constant 0 : i32
    return %c0_i32, %c0_i32_0 : i32, i32
  }
  func.func @transform_5(%arg0: i32) -> (i32, i32) {
    %c0_i32 = arith.constant 0 : i32
    %c0_i32_0 = arith.constant 0 : i32
    %c0_i32_1 = arith.constant 0 : i32
    return %c0_i32, %c0_i32_0 : i32, i32
  }
  func.func @transform_6(%arg0: i32) -> (i32, i32) {
    %c0_i32 = arith.constant 0 : i32
    %c0_i32_0 = arith.constant 0 : i32
    %c0_i32_1 = arith.constant 0 : i32
    return %c0_i32, %c0_i32_0 : i32, i32
  }
  func.func @transform_7(%arg0: i32) -> (i32, i32) {
    %c0_i32 = arith.constant 0 : i32
    %c0_i32_0 = arith.constant 0 : i32
    %c0_i32_1 = arith.constant 0 : i32
    return %c0_i32, %c0_i32_0 : i32, i32
  }
  func.func @transform_8(%arg0: i32) -> (i32, i32) {
    %c0_i32 = arith.constant 0 : i32
    %c0_i32_0 = arith.constant 0 : i32
    %c0_i32_1 = arith.constant 0 : i32
    return %c0_i32, %c0_i32_0 : i32, i32
  }
  func.func @transform_9(%arg0: i32) -> (i32, i32) {
    %c0_i32 = arith.constant 0 : i32
    %c0_i32_0 = arith.constant 0 : i32
    %c0_i32_1 = arith.constant 0 : i32
    return %c0_i32, %c0_i32_0 : i32, i32
  }
  func.func @transform_10(%arg0: i32) -> (i32, i32) {
    %c0_i32 = arith.constant 0 : i32
    %c0_i32_0 = arith.constant 0 : i32
    return %arg0, %c0_i32 : i32, i32
  }
  func.func @transform_11(%arg0: i32) -> (i32, i32) {
    %c0_i32 = arith.constant 0 : i32
    %c0_i32_0 = arith.constant 0 : i32
    return %arg0, %c0_i32 : i32, i32
  }
}

</mosaic_0001>

<bundles_post_ra>
// kernel: _lambda_.1
= control target key start
LH: loop header
LB: loop body
LE: loop exit
PB: predicated region body
PF: predicated region fallthrough
CT: control target
= control target key end

     0   :  { %17 = vsyncpa [#allocation3], 0  ;;  %s541_s0 = inlined_call_operand.vmem [shape: f32[8,64], index: 0, kind: input, shape index: {}]   ;;  %s542_s1 = inlined_call_operand.vmem [shape: f32[8,32], index: 1, kind: input, shape index: {}]   ;;  %s543_s2 = inlined_call_operand.vmem [shape: f32[64,128], index: 2, kind: input, shape index: {}]   ;;  %s544_s3 = inlined_call_operand.vmem [shape: f32[1,128], index: 3, kind: input, shape index: {}]   ;;  %s545_s4 = inlined_call_operand.vmem [shape: f32[128,128], index: 4, kind: input, shape index: {}]   ;;  %s546_s5 = inlined_call_operand.vmem [shape: f32[1,128], index: 5, kind: input, shape index: {}]   ;;  %s547_s6 = inlined_call_operand.vmem [shape: f32[32,128], index: 6, kind: input, shape index: {}]   ;;  %s548_s7 = inlined_call_operand.vmem [shape: f32[1,128], index: 7, kind: input, shape index: {}]   ;;  %s549_s8 = inlined_call_operand.hbm [shape: f32[128,128], index: 8, kind: input, shape index: {}]   ;;  %s550_s9 = inlined_call_operand.vmem [shape: f32[1,128], index: 9, kind: input, shape index: {}]   ;;  %s551_s10 = inlined_call_operand.hbm [shape: f32[8,128], index: 10, kind: output, shape index: {0}]   ;;  %s552_s11 = inlined_call_operand.hbm [shape: f32[8,128], index: 11, kind: output, shape index: {1}]  }
   0x1   :  { %18 = vsyncpa [#allocation4], 0 }
   0x2   :  { %19 = vsyncpa [#allocation7], 0  ;;  %s40_s19 = sshll.u32 %s549_s8, 4  ;;  %s365_s20 = smov [#allocation2]   ;;  %s41_s19 = int_to_ptr.hbm [resolvable:$true] %s40_s19 }
   0x3   :  { %s42_s21 = sshll.u32 %s365_s20, 4  ;;  %s366_s22 = smov 128   ;;  %s43_s21 = int_to_ptr.vmem [resolvable:$true] %s42_s21 }
   0x4   :  { %s367_s23 = smov 8  }
   0x5   :  { %48 = dma.hbm_to_vmem [thread:$0]  %s41_s19, 2048, %s43_s21, [#allocation3], %s366_s22, %s366_s22, %s367_s23  }
   0x6   :  { %359 = dma.done.wait [#allocation3], 2048  }
   0x7   :  { %360 = vsyncadd [#allocation3], 4294965248  ;;  %v63_v0 = vld [vmem:[%s543_s2 + $0x38] sm:$0xff]  ;;  %v62_v1 = vld [vmem:[%s543_s2 + $0x30] sm:$0xff]  ;;  %vm175_vm0 = vcmask 261120   ;;  %vm85_vm1 = vcmask 523264  }
   0x8   :  { %97 = vmatpush.msra.mxu0 %v63_v0  ;;  %v153_v2 = vld [vmem:[%s547_s6 + $0x18] sm:$0xff]  ;;  %v152_v3 = vld [vmem:[%s547_s6 + $0x10] sm:$0xff]  ;;  %v61_v4 = vld [vmem:[%s543_s2 + $0x28] sm:$0xff]  ;;  %s369_s24 = smov [#allocation6]  }
   0x9   :  { %191 = vmatpush.msra.mxu2 %v153_v2  ;;  %v151_v5 = vld [vmem:[%s547_s6 + $0x8] sm:$0xff]  ;;  %v60_v6 = vld [vmem:[%s543_s2 + $0x20] sm:$0xff]  ;;  %v80_v7 = vld [vmem:[%s545_s4 + $0x78] sm:$0xff]  ;;  %s255_s25 = sshll.u32 %s369_s24, 4  ;;  %s256_s25 = int_to_ptr.vmem [resolvable:$true] %s255_s25 }
   0xa   :  { %98 = vmatpush.msra.mxu0 %v62_v1  ;;  %v150_v8 = vld [vmem:[%s547_s6] sm:$0xff]  ;;  %113 = vmatpush.msra.mxu1 %v80_v7  ;;  %v79_v9 = vld [vmem:[%s545_s4 + $0x70] sm:$0xff]  ;;  %v170_v10 = vld [vmem:[#allocation2 + $0x78] sm:$0xff]  ;;  %s257_s6 = sshll.u32 %s552_s11, 4  ;;  %s258_s6 = int_to_ptr.hbm [resolvable:$true] %s257_s6 }
   0xb   :  { %192 = vmatpush.msra.mxu2 %v152_v3  ;;  %v59_v11 = vld [vmem:[%s543_s2 + $0x18] sm:$0xff]  ;;  %v149_v12 = vld [vmem:[%s542_s1] sm:$0xff]  ;;  %203 = vmatpush.msra.mxu3 %v170_v10  ;;  %v169_v13 = vld [vmem:[#allocation2 + $0x70] sm:$0xff] }
   0xc   :  { %99 = vmatpush.msra.mxu0 %v61_v4  ;;  %114 = vmatpush.msra.mxu1 %v79_v9  ;;  %v78_v14 = vld [vmem:[%s545_s4 + $0x68] sm:$0xff]  ;;  %v58_v16 = vld [vmem:[%s543_s2 + $0x10] sm:$0xff]  ;;  %v77_v17 = vld [vmem:[%s545_s4 + $0x60] sm:$0xff] }
   0xd   :  { %193 = vmatpush.msra.mxu2 %v151_v5  ;;  %v168_v15 = vld [vmem:[#allocation2 + $0x68] sm:$0xff]  ;;  %204 = vmatpush.msra.mxu3 %v169_v13  ;;  %v167_v18 = vld [vmem:[#allocation2 + $0x60] sm:$0xff]  ;;  %v76_v20 = vld [vmem:[%s545_s4 + $0x58] sm:$0xff] }
   0xe   :  { %100 = vmatpush.msra.mxu0 %v60_v6  ;;  %v57_v19 = vld [vmem:[%s543_s2 + $0x8] sm:$0xff]  ;;  %115 = vmatpush.msra.mxu1 %v78_v14  ;;  %v166_v21 = vld [vmem:[#allocation2 + $0x58] sm:$0xff]  ;;  %v56_v22 = vld [vmem:[%s543_s2] sm:$0xff]  ;;  %s246_s2 = sshll.u32 %s551_s10, 4  ;;  %s247_s2 = int_to_ptr.hbm [resolvable:$true] %s246_s2 }
   0xf   :  { %194 = vmatpush.msra.mxu2 %v150_v8  ;;  %205 = vmatpush.msra.mxu3 %v168_v15  ;;  %v55_v23 = vld [vmem:[%s541_s0] sm:$0xff]  ;;  %v75_v24 = vld [vmem:[%s545_s4 + $0x50] sm:$0xff]  ;;  %v74_v26 = vld [vmem:[%s545_s4 + $0x48] sm:$0xff] }
  0x10   :  { %101 = vmatpush.msra.mxu0 %v59_v11  ;;  %273 = vmatmul.msk.f32.vlgmr.msra.gmra.mxu2 %vm175_vm0, %v149_v12  ;;  %v165_v25 = vld [vmem:[#allocation2 + $0x50] sm:$0xff]  ;;  %v164_v27 = vld [vmem:[#allocation2 + $0x48] sm:$0xff]  ;;  %v73_v28 = vld [vmem:[%s545_s4 + $0x40] sm:$0xff] }
  0x11   :  { %116 = vmatpush.msra.mxu1 %v77_v17  ;;  %206 = vmatpush.msra.mxu3 %v167_v18  ;;  %v163_v29 = vld [vmem:[#allocation2 + $0x40] sm:$0xff]  ;;  %v72_v30 = vld [vmem:[%s545_s4 + $0x38] sm:$0xff]  ;;  %v71_v32 = vld [vmem:[%s545_s4 + $0x30] sm:$0xff] }
  0x12   :  { %102 = vmatpush.msra.mxu0 %v58_v16  ;;  %v162_v31 = vld [vmem:[#allocation2 + $0x38] sm:$0xff]  ;;  %v161_v33 = vld [vmem:[#allocation2 + $0x30] sm:$0xff]  ;;  %v70_v34 = vld [vmem:[%s545_s4 + $0x28] sm:$0xff] }
  0x13   :  { %117 = vmatpush.msra.mxu1 %v76_v20  ;;  %207 = vmatpush.msra.mxu3 %v166_v21  ;;  %v160_v35 = vld [vmem:[#allocation2 + $0x28] sm:$0xff]  ;;  %v69_v36 = vld [vmem:[%s545_s4 + $0x20] sm:$0xff]  ;;  %v68_v38 = vld [vmem:[%s545_s4 + $0x18] sm:$0xff] }
  0x14   :  { %103 = vmatpush.msra.mxu0 %v57_v19  ;;  %v159_v37 = vld [vmem:[#allocation2 + $0x20] sm:$0xff]  ;;  %v67_v39 = vld [vmem:[%s545_s4 + $0x10] sm:$0xff]  ;;  %v158_v40 = vld [vmem:[#allocation2 + $0x18] sm:$0xff] }
  0x15   :  { %118 = vmatpush.msra.mxu1 %v75_v24  ;;  %208 = vmatpush.msra.mxu3 %v165_v25  ;;  %v66_v41 = vld [vmem:[%s545_s4 + $0x8] sm:$0xff]  ;;  %v157_v42 = vld [vmem:[#allocation2 + $0x10] sm:$0xff]  ;;  %v65_v43 = vld [vmem:[%s545_s4] sm:$0xff] }
  0x16   :  { %104 = vmatpush.msra.mxu0 %v56_v22  ;;  %v156_v44 = vld [vmem:[#allocation2 + $0x8] sm:$0xff]  ;;  %v155_v45 = vld [vmem:[#allocation2] sm:$0xff] }
  0x17   :  { %272 = vmatmul.msk.f32.vlgmr.msra.gmra.mxu0 %vm85_vm1, %v55_v23  ;;  %119 = vmatpush.msra.mxu1 %v74_v26  ;;  %v280_v46 = vld [vmem:[%s548_s7] ss:$0 sm:$0xff] }
  0x18   :  { %209 = vmatpush.msra.mxu3 %v164_v27  ;;  %v279_v47 = vld [vmem:[%s544_s3] ss:$0 sm:$0xff]  ;;  %s368_s3 = smov [#allocation5]  }
  0x19   :  { %120 = vmatpush.msra.mxu1 %v73_v28  ;;  %v281_v54 = vld [vmem:[%s546_s5] ss:$0 sm:$0xff]  ;;  %s244_s5 = sshll.u32 %s368_s3, 4  ;;  %s245_s5 = int_to_ptr.vmem [resolvable:$true] %s244_s5 }
  0x1a   :  { %210 = vmatpush.msra.mxu3 %v163_v29  ;;  %v282_v57 = vld [vmem:[%s550_s9] ss:$0 sm:$0xff] }
  0x1b   :  { %121 = vmatpush.msra.mxu1 %v72_v30 }
  0x1c   :  { %211 = vmatpush.msra.mxu3 %v162_v31 }
  0x1d   :  { %122 = vmatpush.msra.mxu1 %v71_v32 }
  0x1e   :  { %212 = vmatpush.msra.mxu3 %v161_v33 }
  0x1f   :  { %123 = vmatpush.msra.mxu1 %v70_v34 }
  0x20   :  { %213 = vmatpush.msra.mxu3 %v160_v35 }
  0x21   :  { %124 = vmatpush.msra.mxu1 %v69_v36 }
  0x22   :  { %214 = vmatpush.msra.mxu3 %v159_v37 }
  0x23   :  { %125 = vmatpush.msra.mxu1 %v68_v38 }
  0x24   :  { %215 = vmatpush.msra.mxu3 %v158_v40 }
  0x25   :  { %126 = vmatpush.msra.mxu1 %v67_v39 }
  0x26   :  { %216 = vmatpush.msra.mxu3 %v157_v42 }
  0x27   :  { %127 = vmatpush.msra.mxu1 %v66_v41 }
  0x28   :  { %217 = vmatpush.msra.mxu3 %v156_v44 }
  0x29   :  { %128 = vmatpush.msra.mxu1 %v65_v43 }
  0x2a   :  { %218 = vmatpush.msra.mxu3 %v155_v45 }
  0x93   :  { %v196_v48 = vpop.f32.mrf.mxu2 }
  0x94   :  { %v106_v49 = vpop.f32.mrf.mxu0  ;;  %v197_v50 = vadd.f32 %v280_v46, %v196_v48 }
  0x95   :  { %v107_v51 = vadd.f32 %v279_v47, %v106_v49 }
  0x96   :  { %v199_v52 = vmax.f32 %v197_v50, 0.0 }
  0x97   :  { %v109_v53 = vmax.f32 %v107_v51, 0.0 }
  0x98   :  { %219 = vmatmul.f32.vlgmr.msra.gmra.mxu3 %v199_v52 }
  0x99   :  { %129 = vmatmul.f32.vlgmr.msra.gmra.mxu1 %v109_v53 }
 0x116   :  { %v130_v55 = vpop.f32.mrf.mxu1 }
 0x117   :  { %v131_v56 = vadd.f32 %v281_v54, %v130_v55 }
 0x119   :  { %v133_v58 = vmul.f32 %v131_v56, %v131_v56 }
 0x11b   :  { %134 = vadd.xlane.f32.xlu0 %v133_v58  ;;  %v220_v59 = vpop.f32.mrf.mxu3 }
 0x11c   :  { %v221_v60 = vadd.f32 %v282_v57, %v220_v59 }
 0x11e   :  { %v223_v61 = vmul.f32 %v221_v60, %v221_v60 }
 0x123   :  { %224 = vadd.xlane.f32.xlu0 %v223_v61 }
 0x18e   :  { %v135_v62 = vpop.xlane.xlu0 %134 }
 0x18f   :  { %v136_v63 = vmax.f32 %v135_v62, 1e-24 }
 0x191   :  { %283 = vrsqrt.f32 %v136_v63  ;;  %vm143_vm3 = vweird.f32 %v136_v63 }
 0x196   :  { %v225_v0 = vpop.xlane.xlu0 %224 }
 0x197   :  { %v284_v1 = vpop.eup %283  ;;  %v226_v2 = vmax.f32 %v225_v0, 1e-24 }
 0x198   :  { %v138_v3 = vmul.f32 %v284_v1, %v136_v63  ;;  %vm144_vm2 = vweird.f32 %v284_v1 }
 0x199   :  { %285 = vrsqrt.f32 %v226_v2  ;;  %vm145_vm4 = vmor %vm143_vm3, %vm144_vm2  ;;  %vm233_vm6 = vweird.f32 %v226_v2 }
 0x19a   :  { %v139_v4 = vmul.f32 %v284_v1, %v138_v3 }
 0x19c   :  { %v140_v5 = vmul.f32 0.5, %v139_v4 }
 0x19e   :  { %v141_v6 = vsub.f32 1.5, %v140_v5 }
 0x19f   :  { %v286_v7 = vpop.eup %285 }
 0x1a0   :  { %v142_v8 = vmul.f32 %v284_v1, %v141_v6  ;;  %v228_v9 = vmul.f32 %v286_v7, %v226_v2  ;;  %vm234_vm5 = vweird.f32 %v286_v7 }
 0x1a1   :  { %vm235_vm7 = vmor %vm233_vm6, %vm234_vm5 }
 0x1a2   :  { %v229_v10 = vmul.f32 %v286_v7, %v228_v9  ;;  %v146_v11 = vsel %vm145_vm4, %v284_v1, %v142_v8 }
 0x1a3   :  { %v147_v12 = vmul.f32 %v146_v11, %v131_v56 }
 0x1a4   :  { %v230_v13 = vmul.f32 0.5, %v229_v10 }
 0x1a5   :  { %148 = vst [vmem:[#allocation5] sm:$0xff] %v147_v12 }
 0x1a6   :  { %v231_v14 = vsub.f32 1.5, %v230_v13  ;;  %249 = dma.vmem_to_hbm [thread:$0]  %s245_s5, 128, %s247_s2, [#allocation4]  }
 0x1a8   :  { %v232_v15 = vmul.f32 %v286_v7, %v231_v14 }
 0x1aa   :  { %v236_v16 = vsel %vm235_vm7, %v286_v7, %v232_v15 }
 0x1ab   :  { %v237_v17 = vmul.f32 %v236_v16, %v221_v60 }
 0x1ad   :  { %238 = vst [vmem:[#allocation6] sm:$0xff] %v237_v17 }
 0x1ae   :  { %260 = dma.vmem_to_hbm [thread:$0]  %s256_s25, 128, %s258_s6, [#allocation7]  }
 0x1af   :  { %361 = dma.done.wait [#allocation4], 128  }
 0x1b0   :  { %362 = vsyncadd [#allocation4], 4294967168 }
 0x1b1   :  { %363 = dma.done.wait [#allocation7], 128  }
 0x1b2   :  { %364 = vsyncadd [#allocation7], 4294967168 }
 0x1b3   :  { %269 = vsyncpa [#allocation3], 1 }
 0x1b4   :  { %270 = vsyncpa [#allocation4], 1 }
 0x1b5   :  { %271 = vsyncpa [#allocation7], 1 }

</bundles_post_ra>
